<compile_context>
chip_gen: v7x
topology: tpu7x:2x2x1
jax: 0.10.0
libtpu: 0.0.40
codegen_flags: <defaults>
</compile_context>

<pallas_src>
from functools import partial

import jax
import jax.numpy as jnp
from jax.experimental import pallas as pl
from jax.experimental.pallas import tpu as pltpu

LP = 128  # lane-dense padded output width


def _textcnn_kernel(x_ref, w_ref, b_ref, out_ref, *, num_labels):
    # x_ref:   (rows, H)   f32 hidden states, rows = block_b * S
    # w_ref:   (H, 128)    bf16 folded conv(x)fc weights; tap k at lanes [k*L:(k+1)*L]
    # b_ref:   (1, 128)    f32 folded bias (lanes [0:L] valid)
    # out_ref: (rows, 128) bf16 logits slab; valid rows/lanes sliced outside
    rows = x_ref.shape[0]
    lanes = out_ref.shape[1]

    # Single MXU matmul over full, aligned rows; bf16 inputs, f32 accumulation.
    x = x_ref[...].astype(jnp.bfloat16)
    y = jnp.dot(x, w_ref[...], preferred_element_type=jnp.float32)  # (rows, 128)

    # out[r, 0:L] = y[r, 0:L] + y[r+1, L:2L] + y[r+2, 2L:3L]
    # Realign taps with XLU rolls (sublane shift -1/-2, lane shift -L/-2L);
    # wrapped rows / junk lanes land in padding that is dropped outside.
    y1 = pltpu.roll(pltpu.roll(y, shift=rows - 1, axis=0),
                    shift=lanes - num_labels, axis=1)
    y2 = pltpu.roll(pltpu.roll(y, shift=rows - 2, axis=0),
                    shift=lanes - 2 * num_labels, axis=1)

    out_ref[...] = (y + y1 + y2 + b_ref[...]).astype(out_ref.dtype)


def fold_textcnn_params(w_conv, b_conv, w_fc, b_fc, lanes=LP):
    """One-time init: fold Conv1d taps + FC into a packed (H, 128) weight.

    w_conv: (C, H, 3) PyTorch Conv1d layout; b_conv: (C,)
    w_fc:   (L, C)    PyTorch Linear layout;  b_fc:  (L,)
    Returns (w_pack bf16 (H,128), b_pack f32 (1,128), num_labels).
    """
    C, H, K = w_conv.shape
    L = w_fc.shape[0]
    assert K == 3, "kernel folds exactly the 3 conv taps of kernel_size=3"
    assert 3 * L <= lanes, "packed-tap layout requires 3*num_labels <= 128"

    wconv_k = jnp.transpose(w_conv, (2, 1, 0)).astype(jnp.float32)        # (3, H, C)
    wfc_k = jnp.transpose(w_fc, (1, 0)).astype(jnp.float32)               # (C, L)
    w_eff = jnp.einsum("khc,cl->khl", wconv_k, wfc_k)                     # (3, H, L)
    b_eff = b_conv.astype(jnp.float32) @ wfc_k + b_fc.astype(jnp.float32)  # (L,)

    # Pack the 3 taps into ONE 128-lane block at lane offsets 0, L, 2L.
    w_pack = jnp.zeros((H, lanes), jnp.float32)
    for k in range(3):
        w_pack = w_pack.at[:, k * L:(k + 1) * L].set(w_eff[k])
    w_pack = w_pack.astype(jnp.bfloat16)
    b_pack = jnp.zeros((1, lanes), jnp.float32).at[0, :L].set(b_eff)
    return w_pack, b_pack, L


def _vmem_capacity_bytes():
    try:
        return int(pltpu.get_tpu_info().vmem_capacity_bytes)
    except Exception:
        return 64 * 1024 * 1024  # conservative (v7x-sized per-core VMEM)


def _pick_block_b(B, S, H, lanes, vmem_cap, in_bytes=4, out_bytes=2):
    """Largest batch-divisor block that fits a per-generation VMEM budget.

    Budget counts BOTH double-buffered pipelined operands (f32 input rows +
    bf16 output rows).  On dual-TC / 64 MiB parts (v7x) prefer grid % 2 == 0
    so the parallel grid axis shards across both TensorCores.
    """
    dual_core = vmem_cap <= 64 * 1024 * 1024
    row_bytes = 2 * (H * in_bytes) + 2 * (lanes * out_bytes)
    budget = (8 * 1024 * 1024) if dual_core else (24 * 1024 * 1024)
    cap = max(1, budget // max(1, S * row_bytes))

    divs = [d for d in range(1, B + 1) if B % d == 0]
    aligned = lambda d, m: (d * S) % m == 0
    fitting = [d for d in divs if d <= cap]
    # Prefer 16-row alignment (bf16 output sublane packing), accept 8.
    ok = [d for d in fitting if aligned(d, 16)] or [d for d in fitting if aligned(d, 8)]
    if not ok:
        # Nothing aligned fits the budget: take the smallest aligned divisor
        # (legality first, minimal VMEM), else fall back to one full block.
        alla = [d for d in divs if aligned(d, 16)] or [d for d in divs if aligned(d, 8)]
        return (min(alla), dual_core) if alla else (B, dual_core)
    if dual_core:
        pref = [d for d in ok if (B // d) % 2 == 0]
        if pref:
            return max(pref), dual_core
    return max(ok), dual_core


def textcnn_forward(hidden, w_pack, b_pack, num_labels):
    """hidden: (B, S, H) f32 (stand-in for BERT last_hidden_state).
    w_pack/b_pack/num_labels from fold_textcnn_params (one-time init).
    Returns logits (B, S-2, num_labels) in bf16 (f32 accumulation inside).
    """
    B, S, H = hidden.shape
    lanes = w_pack.shape[1]
    assert S >= 3
    SO = S - 2

    # Flatten batch into rows (metadata-only reshape, no dtype cast pass).
    x2 = hidden.reshape(B * S, H)

    vmem_cap = _vmem_capacity_bytes()
    block_b, dual_core = _pick_block_b(B, S, H, lanes, vmem_cap)
    rows_blk = block_b * S
    grid = (B // block_b,)

    # Double-buffered in/out blocks + (tiny) weight/bias, with 2x headroom.
    need = (2 * rows_blk * H * 4        # f32 activation blocks
            + 2 * rows_blk * lanes * 2  # bf16 output blocks
            + 2 * H * lanes * 2         # bf16 packed weight
            + 2 * lanes * 4)            # f32 bias
    vmem_ceiling = (28 * 1024 * 1024) if dual_core else (64 * 1024 * 1024)
    vmem_limit = int(min(max(2 * need, 8 * 1024 * 1024), vmem_ceiling))

    cost = pl.CostEstimate(
        flops=2 * (B * S) * H * lanes + 3 * (B * S) * lanes,
        transcendentals=0,
        bytes_accessed=(B * S * H * 4 + H * lanes * 2 + lanes * 4
                        + B * S * lanes * 2),
    )

    out = pl.pallas_call(
        partial(_textcnn_kernel, num_labels=num_labels),
        out_shape=jax.ShapeDtypeStruct((B * S, lanes), jnp.bfloat16),
        grid_spec=pltpu.PrefetchScalarGridSpec(
            num_scalar_prefetch=0,
            grid=grid,
            in_specs=[
                pl.BlockSpec((rows_blk, H), lambda i: (i, 0)),
                pl.BlockSpec((H, lanes), lambda i: (0, 0)),
                pl.BlockSpec((1, lanes), lambda i: (0, 0)),
            ],
            out_specs=pl.BlockSpec((rows_blk, lanes), lambda i: (i, 0)),
        ),
        compiler_params=pltpu.CompilerParams(
            dimension_semantics=("parallel",),
            vmem_limit_bytes=vmem_limit,
        ),
        cost_estimate=cost,
    )(x2, w_pack, b_pack)

    # Drop the padded seq rows and padded label lanes (plain XLA, free).
    return out.reshape(B, S, lanes)[:, :SO, :num_labels]


if __name__ == "__main__":
    # Small, module-consistent shapes.
    B = 4          # batch
    S = 16         # sequence length
    H = 32         # hidden size (stand-in for bert_config.hidden_size)
    C = 128        # Conv1d out_channels (as in the module)
    L = 4          # num_labels
    VOCAB = 100

    key = jax.random.PRNGKey(0)
    k_emb, k_ids, k_wc, k_bc, k_wf, k_bf = jax.random.split(key, 6)

    # Deterministic stand-in "BERT": embedding lookup -> (B, S, H) hidden states.
    emb_table = jax.random.normal(k_emb, (VOCAB, H), dtype=jnp.float32) * 0.1
    input_ids = jax.random.randint(k_ids, (B, S), 0, VOCAB)
    hidden = emb_table[input_ids]                      # (B, S, H) f32

    # Deterministic module parameters (shapes from __init__).
    w_conv = jax.random.normal(k_wc, (C, H, 3), dtype=jnp.float32) * 0.05
    b_conv = jax.random.normal(k_bc, (C,), dtype=jnp.float32) * 0.05
    w_fc = jax.random.normal(k_wf, (L, C), dtype=jnp.float32) * 0.05
    b_fc = jax.random.normal(k_bf, (L,), dtype=jnp.float32) * 0.05

    # One-time weight folding (hoisted out of the per-call forward path).
    w_pack, b_pack, num_labels = fold_textcnn_params(w_conv, b_conv, w_fc, b_fc)

    logits = textcnn_forward(hidden, w_pack, b_pack, num_labels)
    logits = jax.block_until_ready(logits)

    # Pure-JAX f32 reference (Conv1d valid + bias, then Linear), PyTorch semantics.
    x_ncw = jnp.transpose(hidden, (0, 2, 1))           # (B, H, S)
    conv_ref = jax.lax.conv_general_dilated(
        x_ncw, w_conv, window_strides=(1,), padding="VALID",
        dimension_numbers=("NCH", "OIH", "NCH")) + b_conv[None, :, None]
    ref = jnp.einsum("bcs,lc->bsl", conv_ref, w_fc) + b_fc

    assert logits.shape == (B, S - 2, L)
    # bf16 matmul inputs + bf16 output store (f32 accumulation): loosen tolerance.
    assert jnp.allclose(logits.astype(jnp.float32), ref, atol=2e-2, rtol=2e-2), \
        "mismatch vs reference"

    print("KERNEL_OK")
</pallas_src>

<mosaic_0001>
module attributes {stable_mosaic.version = 11 : i64} {
  func.func @_textcnn_kernel(%arg0: i32, %arg1: memref<32x32xf32, #tpu.memory_space<vmem>>, %arg2: memref<32x128xbf16, #tpu.memory_space<vmem>>, %arg3: memref<1x128xf32, #tpu.memory_space<vmem>>, %arg4: memref<32x128xbf16, #tpu.memory_space<vmem>>) attributes {dimension_semantics = [#tpu.dimension_semantics<parallel>], iteration_bounds = array<i64: 2>, scalar_prefetch = 0 : i64, scratch_operands = 0 : i64, tpu.core_type = #tpu.core_type<tc>, window_params = [{transform_indices = @transform_0, window_bounds = array<i64: 32, 32>}, {pipeline_mode = #tpu.pipeline_mode<synchronous>, transform_indices = @transform_1, window_bounds = array<i64: 32, 128>}, {pipeline_mode = #tpu.pipeline_mode<synchronous>, transform_indices = @transform_2, window_bounds = array<i64: 1, 128>}, {transform_indices = @transform_3, window_bounds = array<i64: 32, 128>}]} {
    %c0 = arith.constant 0 : index
    %c0_0 = arith.constant 0 : index
    %0 = vector.load %arg1[%c0, %c0_0] : memref<32x32xf32, #tpu.memory_space<vmem>>, vector<32x32xf32>
    %1 = arith.truncf %0 : vector<32x32xf32> to vector<32x32xbf16>
    %c0_1 = arith.constant 0 : index
    %c0_2 = arith.constant 0 : index
    %2 = vector.load %arg2[%c0_1, %c0_2] : memref<32x128xbf16, #tpu.memory_space<vmem>>, vector<32x128xbf16>
    %cst = arith.constant dense<0.000000e+00> : vector<32x128xf32>
    %3 = tpu.matmul %1, %2, %cst {dimension_numbers = #tpu.dot_dimension_numbers<[1], [0], [0], [1], [0, 0, 1, 1], [], []>} : vector<32x32xbf16>, vector<32x128xbf16>, vector<32x128xf32> -> vector<32x128xf32>
    %c31_i32 = arith.constant 31 : i32
    %4 = tpu.dynamic_rotate %3 by %c31_i32 dim 0 : vector<32x128xf32>, i32 -> vector<32x128xf32>
    %c124_i32 = arith.constant 124 : i32
    %5 = tpu.dynamic_rotate %4 by %c124_i32 dim 1 : vector<32x128xf32>, i32 -> vector<32x128xf32>
    %c30_i32 = arith.constant 30 : i32
    %6 = tpu.dynamic_rotate %3 by %c30_i32 dim 0 : vector<32x128xf32>, i32 -> vector<32x128xf32>
    %c120_i32 = arith.constant 120 : i32
    %7 = tpu.dynamic_rotate %6 by %c120_i32 dim 1 : vector<32x128xf32>, i32 -> vector<32x128xf32>
    %8 = arith.addf %3, %5 : vector<32x128xf32>
    %9 = arith.addf %8, %7 : vector<32x128xf32>
    %c0_3 = arith.constant 0 : index
    %c0_4 = arith.constant 0 : index
    %10 = vector.load %arg3[%c0_3, %c0_4] : memref<1x128xf32, #tpu.memory_space<vmem>>, vector<1x128xf32>
    %11 = vector.broadcast %10 : vector<1x128xf32> to vector<32x128xf32>
    %12 = arith.addf %9, %11 : vector<32x128xf32>
    %13 = arith.truncf %12 : vector<32x128xf32> to vector<32x128xbf16>
    %c0_5 = arith.constant 0 : index
    %c0_6 = arith.constant 0 : index
    %14 = vector.load %arg4[%c0_5, %c0_6] : memref<32x128xbf16, #tpu.memory_space<vmem>>, vector<32x128xbf16>
    tpu.vector_store %arg4[%c0_5, %c0_6], %13 {strides = array<i32>} : memref<32x128xbf16, #tpu.memory_space<vmem>>, vector<32x128xbf16>,
    return
  }
  func.func @transform_0(%arg0: i32) -> (i32, i32) {
    %c0_i32 = arith.constant 0 : i32
    %c0_i32_0 = arith.constant 0 : i32
    return %arg0, %c0_i32 : i32, i32
  }
  func.func @transform_1(%arg0: i32) -> (i32, i32) {
    %c0_i32 = arith.constant 0 : i32
    %c0_i32_0 = arith.constant 0 : i32
    %c0_i32_1 = arith.constant 0 : i32
    return %c0_i32, %c0_i32_0 : i32, i32
  }
  func.func @transform_2(%arg0: i32) -> (i32, i32) {
    %c0_i32 = arith.constant 0 : i32
    %c0_i32_0 = arith.constant 0 : i32
    %c0_i32_1 = arith.constant 0 : i32
    return %c0_i32, %c0_i32_0 : i32, i32
  }
  func.func @transform_3(%arg0: i32) -> (i32, i32) {
    %c0_i32 = arith.constant 0 : i32
    %c0_i32_0 = arith.constant 0 : i32
    return %arg0, %c0_i32 : i32, i32
  }
}

</mosaic_0001>

<bundles_post_ra>
// kernel: tpu_custom_call.1
= control target key start
LH: loop header
LB: loop body
LE: loop exit
PB: predicated region body
PF: predicated region fallthrough
CT: control target
= control target key end

     0   :  { %8 = vsyncpa [#allocation3], 0  ;;  %s704_s0 = inlined_call_operand.vmem [shape: f32[64,32], index: 0, kind: input, shape index: {}]   ;;  %s705_s1 = inlined_call_operand.vmem [shape: bf16[32,128], index: 1, kind: input, shape index: {}]   ;;  %s706_s2 = inlined_call_operand.vmem [shape: f32[1,128], index: 2, kind: input, shape index: {}]   ;;  %s707_s3 = inlined_call_operand.hbm [shape: bf16[64,128], index: 3, kind: output, shape index: {}]  }
   0x1   :  { %10 = vsyncpa [#allocation3 + $0x1], 0  ;;  %s585_s12 = smov 0   ;;  %s587_s13 = smov 0  }
   0x2   :  { %s589_s14 = smov 0   ;;  %s591_s15 = smov 0  }
   0x3 LB: > { %s606_s16 = sadd.s32 4294967295, %s558_s15   ;;  %s402_s17 = sadd.s32 4294967294, %s558_s15   ;;  %s558_s15 = sphi %s591_s15, %s713_s15   ;;  %s554_s14 = sphi %s589_s14, %s712_s14   ;;  %s550_s13 = sphi %s587_s13, %s711_s13   ;;  %s546_s12 = sphi %s585_s12, %s710_s12  }
   0x4   : > { %s610_s18 = sadd.s32 1, %s558_s15   ;;  %s91_s19 = sadd.s32 1, %s554_s14 }
   0x5   : > { %s88_s20 = ssub.s32 %s558_s15, %s610_s18  ;;  %p101_p0 = scmp.ne.s32.totalorder %s554_s14, %s550_s13 }
   0x6   : > { %p89_p1 = scmp.eq.s32.totalorder %s88_s20, 0  ;;  %p102_p2 = scmp.eq.s32.totalorder %s606_s16, 1 }
   0x7   : > { %p107_p3 = scmp.ne.s32.totalorder %s550_s13, %s546_s12  ;;  %p108_p4 = scmp.eq.s32.totalorder %s402_s17, 1 }
   0x8   : > { %s621_s21 = scalar_select %p89_p1, %s554_s14, %s91_s19  }
   0x9   : > { %p623_p5 = por %p102_p2, %p101_p0  ;;  %p627_p6 = por %p108_p4, %p107_p3 }
   0xa   : > { %p405_p7 = scmp.ge.s32.totalorder %s558_s15, 1  ;;  %p141_p8 = scmp.lt.s32.totalorder %s558_s15, 3 }
   0xc   : > { %p142_p9 = pnand %p405_p7, %p141_p8 }
   0xd   : > { %v494_v0 = vld [vmem:[%s705_s1] sm:$0xff] (!%p142_p9)   ;;  %s407_s26 = sshll.u32 (!%p142_p9), %s606_s16, 2  ;;  %v495_v1 = vld [vmem:[%s705_s1 + $0x8] sm:$0xff] (!%p142_p9)   ;;  %vm195_vm0 = vcmask (!%p142_p9), 261120   ;;  %v255_v8 = vlaneseq (!%p142_p9)  ;;  %s560_s6 = smov (!%p142_p9), 124  }
   0xe   : > { %145 = sbr.rel (%p142_p9) target bundleno = 394 (0x18a), region = 32  ;;  %p166_p10 = scmp.lt.s32.totalorder (!%p142_p9), %s407_s26, 7  ;;  %443 = vmatprep.subr.bf16.mxu0 (!%p142_p9), %v494_v0  ;;  %v413_v36 = vld [vmem:[%s706_s2] ss:$0 sm:$0xff] (!%p142_p9) }
   0xf   : > { %444 = vmatpush3.bf16.msra.mxu0 (!%p142_p9), %v494_v0  ;;  %v256_v9 = vshrl.u32 (!%p142_p9), %v255_v8, 7  ;;  %s561_s7 = smov (!%p142_p9), 120   ;;  %s162_s8 = sand.u32 (!%p142_p9), 1, %s550_s13  }
  0x10   : > { %445 = vmatprep.subr.bf16.mxu0 (!%p142_p9), %v495_v1  ;;  %s406_s11 = sshll.u32 (!%p142_p9), %s162_s8, 4  ;;  %s427_s20 = sshll.u32 (!%p142_p9), %s606_s16, 8 }
  0x11   : > { %vm257_vm1 = vcmp.lt.s32.totalorder (!%p142_p9), %v256_v9, 7  ;;  %vm274_vm2 = vcmp.lt.s32.totalorder (!%p142_p9), %v256_v9, 6  ;;  %s164_s17 = scalar_lea.vmem (!%p142_p9), [#allocation2], %s406_s11  ;;  %s663_s27 = scalar_lea.sflag (!%p142_p9), [#allocation3], %s162_s8 }
  0x12   : > { %s340_s19 = sshll.u32 (!%p142_p9), %s164_s17, 4  ;;  %s562_s16 = smov (!%p142_p9), [#allocation2]   ;;  %s656_s19 = int_to_ptr.vmem [resolvable:$true] %s340_s19 }
  0x13   : > { %446 = vmatpush3.bf16.msra.mxu0 (!%p142_p9), %v495_v1  ;;  %s496_s28 = scalar_lea.vmem (!%p142_p9), %s656_s19, 256 }
  0x14   : > { %p497_p11 = scmp.ne.s32.totalorder (!%p142_p9), %s656_s19, %s496_s28 }
  0x15   : > { %s715_s26 = smov (!%p166_p10, %s407_s26), 7 }
  0x16   : > { %s408_s29 = sshll.u32 %s715_s26, 3  ;;  %s661_s26 = scalar_lea.hbm %s707_s3, %s427_s20 }
  0x17   : > { %s169_s5 = scalar_lea.vmem %s704_s0, %s408_s29  ;;  %p498_p12 = pnand %p497_p11, %p623_p5 }
  0x18   : > { %v173_v2 = vld [vmem:[%s169_s5] sm:$0xff]  ;;  %v174_v3 = vld [vmem:[%s169_s5 + $0x8] sm:$0xff]  ;;  %v175_v4 = vld [vmem:[%s169_s5 + $0x10] sm:$0xff]  ;;  %s500_s29 = sshll.u32 %s562_s16, 4  ;;  %s501_s29 = int_to_ptr.vmem [resolvable:$false] %s500_s29 }
  0x19   : > { %v177_v5 = vpack.c.bf16 %v174_v3, %v173_v2  ;;  %v176_v6 = vld [vmem:[%s169_s5 + $0x18] sm:$0xff]  ;;  %p499_p13 = pneg %p498_p12  ;;  %s502_s30 = scalar_lea.vmem %s501_s29, 512 }
  0x1a   : > { %v178_v7 = vpack.c.bf16 %v176_v6, %v175_v4  ;;  %p503_p0 = scmp.lt.s32.totalorder %s656_s19, %s501_s29  ;;  %p504_p1 = scmp.lt.s32.totalorder %s502_s30, %s496_s28 }
  0x1b   : > { %447 = vmatprep.mubr.msk.bf16.mxu0 %vm195_vm0, %v177_v5 }
  0x1c   : > { %448 = vmatmul.mubr.msk.bf16.vlgmr.msra.gmra.mrb[0].mxu0 %vm195_vm0, %v178_v7  ;;  %p505_p2 = por %p504_p1, %p503_p0 }
  0x1e   : > { %p506_p3 = pnand %p505_p2, %p499_p13 }
  0xef   : > { %v449_v10 = vpop.f32.mrb[0].mxu0 }
  0xf0   : > { %v236_v11 = vpop.f32.mrb[1].mxu0  ;;  %v253_v15 = vrot.slane %v449_v10, 1  ;;  %v272_v16 = vrot.slane %v449_v10, 2 }
  0xf1   : > { %v251_v12 = vrot.slane %v236_v11, 1  ;;  %v270_v13 = vrot.slane %v236_v11, 2  ;;  %v450_v14 = vpop.f32.mrb[2].mxu0 }
  0xf2   : > { %v254_v17 = vrot.slane %v450_v14, 1  ;;  %v273_v18 = vrot.slane %v450_v14, 2  ;;  %v239_v19 = vpop.f32.mrb[3].mxu0 }
  0xf3   : > { %v252_v20 = vrot.slane %v239_v19, 1  ;;  %v271_v21 = vrot.slane %v239_v19, 2 }
  0xf4   : > { %v258_v22 = vsel %vm257_vm1, %v253_v15, %v254_v17  ;;  %v261_v23 = vsel %vm257_vm1, %v254_v17, %v251_v12  ;;  %v278_v24 = vsel %vm274_vm2, %v273_v18, %v270_v13  ;;  %v275_v25 = vsel %vm274_vm2, %v272_v16, %v273_v18 }
  0xf5   : > { %266 = vrot.lane.b32.xlu1 %v258_v22, %s560_s6  ;;  %v260_v26 = vsel %vm257_vm1, %v251_v12, %v252_v20  ;;  %v259_v27 = vsel %vm257_vm1, %v252_v20, %v253_v15  ;;  %v276_v28 = vsel %vm274_vm2, %v271_v21, %v272_v16  ;;  %v277_v29 = vsel %vm274_vm2, %v270_v13, %v271_v21 }
  0xf6   : > { %262 = vrot.lane.b32.xlu0 %v260_v26, %s560_s6 }
  0xf9   : > { %268 = vrot.lane.b32.xlu1 %v261_v23, %s560_s6 }
  0xfa   : > { %264 = vrot.lane.b32.xlu0 %v259_v27, %s560_s6 }
  0xfd   : > { %281 = vrot.lane.b32.xlu1 %v276_v28, %s561_s7 }
  0xfe   : > { %279 = vrot.lane.b32.xlu0 %v277_v29, %s561_s7 }
 0x101   : > { %285 = vrot.lane.b32.xlu1 %v278_v24, %s561_s7 }
 0x102   : > { %283 = vrot.lane.b32.xlu0 %v275_v25, %s561_s7 }
 0x167   : > { %v267_v30 = vpop.permute.xlu1 %266 }
 0x168   : > { %v263_v31 = vpop.permute.xlu0 %262  ;;  %v289_v43 = vadd.f32 %v449_v10, %v267_v30 }
 0x169   : > { %v287_v35 = vadd.f32 %v263_v31, %v236_v11 }
 0x16b   : > { %v269_v32 = vpop.permute.xlu1 %268 }
 0x16c   : > { %v265_v33 = vpop.permute.xlu0 %264  ;;  %v290_v41 = vadd.f32 %v450_v14, %v269_v32 }
 0x16d   : > { %v288_v34 = vadd.f32 %v265_v33, %v239_v19 }
 0x16f   : > { %v282_v37 = vpop.permute.xlu1 %281 }
 0x170   : > { %v292_v38 = vadd.f32 %v288_v34, %v282_v37  ;;  %v280_v39 = vpop.permute.xlu0 %279 }
 0x171   : > { %v291_v40 = vadd.f32 %v287_v35, %v280_v39 }
 0x172   : > { %v303_v42 = vadd.f32 %v413_v36, %v292_v38 }
 0x173   : > { %v302_v44 = vadd.f32 %v413_v36, %v291_v40  ;;  %v286_v45 = vpop.permute.xlu1 %285 }
 0x174   : > { %v294_v46 = vadd.f32 %v290_v41, %v286_v45  ;;  %v284_v47 = vpop.permute.xlu0 %283 }
 0x175   : > { %v431_v48 = vpack.c.bf16 %v303_v42, %v302_v44  ;;  %v293_v49 = vadd.f32 %v289_v43, %v284_v47 }
 0x176   : > { %v305_v50 = vadd.f32 %v413_v36, %v294_v46 }
 0x177   : > { %432 = vst [vmem:[%s164_s17] sm:$0xff] %v431_v48   ;;  %v304_v51 = vadd.f32 %v413_v36, %v293_v49 }
 0x179   : > { %v436_v52 = vpack.c.bf16 %v305_v50, %v304_v51 }
 0x17b   : > { %438 = vst [vmem:[%s164_s17 + $0x8] sm:$0xff] %v436_v52  }
 0x17c   : > { %509 = shalt.err (!%p506_p3)
}
 0x17d   : > { %s510_s4 = scalar_lea.hbm %s661_s26, 256  ;;  %s514_s7 = scalar_lea.hbm %s707_s3, 512 }
 0x17e   : > { %p511_p4 = scmp.ne.s32.totalorder %s661_s26, %s510_s4  ;;  %p515_p9 = scmp.lt.u32.totalorder %s661_s26, %s707_s3 }
 0x17f   : > { %p516_p10 = scmp.lt.u32.totalorder %s514_s7, %s510_s4  ;;  %p518_p12 = scmp.lt.u32.totalorder %s510_s4, %s661_s26 }
 0x180   : > { %p512_p7 = pnand %p511_p4, %p623_p5 }
 0x181   : > { %p517_p11 = por %p516_p10, %p515_p9 }
 0x182   : > { %p513_p8 = pneg %p512_p7 }
 0x183   : > { %p519_p13 = por %p518_p12, %p517_p11 }
 0x185   : > { %p520_p0 = pnand %p519_p13, %p513_p8 }
 0x187   : > { %523 = shalt.err (!%p520_p0)
}
 0x188   : > { %s563_s10 = smov 64   ;;  %s564_s11 = smov 4  }
 0x189   : > { %451 = dma.vmem_to_hbm [thread:$0]  (%p623_p5), %s656_s19, 256, %s661_s26, %s663_s27, %s563_s10, %s563_s10, %s564_s11  }
 0x18a PF: > { %p457_p1 = scmp.ge.s32.totalorder %s558_s15, 2  ;;  %s355_s17 = sand.u32 1, %s546_s12  }
 0x18b   : > { %s356_s20 = scalar_lea.sflag [#allocation3], %s355_s17 }
 0x18c   : > { %p454_p2 = pnand %p457_p1, %p627_p6 }
 0x18e   : > { %541 = dma.done.wait (!%p454_p2), %s356_s20, 256  }
 0x18f   : > { %543 = vsyncadd (!%p454_p2), %s356_s20, 4294967040  ;;  %p13_p3 = scmp.ge.s32.totalorder %s610_s18, 4   ;;  %s710_s12 = smov %s550_s13 }
 0x190   : > { %s711_s13 = smov %s554_s14  ;;  %s712_s14 = smov %s621_s21 }
 0x191   : > { %s713_s15 = smov %s610_s18  ;;  %15 = sbr.rel (!%p13_p3) target bundleno = 3 (0x3), region = 67 }
 0x198   :  { %361 = vsyncpa [#allocation3], 1 }
 0x199   :  { %363 = vsyncpa [#allocation3 + $0x1], 1 }

</bundles_post_ra>
